<compile_context>
chip_gen: v7x
topology: tpu7x:2x2x1
jax: 0.10.0
libtpu: 0.0.40
codegen_flags: <defaults>
</compile_context>

<pallas_src>
import functools

import jax
import jax.numpy as jnp
from jax.experimental import pallas as pl
from jax.experimental.pallas import tpu as pltpu


def _channel_attention_kernel(x_ref, w1t_ref, w2t_ref, o_ref,
                              sum_acc, max_acc,
                              *, hw, hw_tile, lacc, tb, needs_mask):
    # x_ref  : (tb, C, hw_tile) in the input's native dtype (current tile)
    # w1t_ref: (C, Ch)  f32   first 1x1 conv weight, pre-transposed
    # w2t_ref: (Ch, C)  f32   second 1x1 conv weight, pre-transposed
    # o_ref  : (tb, C)  in the input's native dtype
    # sum_acc/max_acc: (tb, C, lacc) f32 VMEM running accumulators
    k = pl.program_id(1)
    last = pl.num_programs(1) - 1
    n_chunks = hw_tile // lacc

    @pl.when(k == 0)
    def _init():
        sum_acc[...] = jnp.zeros_like(sum_acc)
        max_acc[...] = jnp.full_like(max_acc, -jnp.inf)

    def _fold(masked):
        # Lane-parallel (VPU-only) folding of hw_tile lanes onto lacc lanes.
        # Chunks are loaded from the ref with static 128-aligned slices and
        # cast to f32 at the point of use; acc is read/written once per step.
        s = sum_acc[...]
        m = max_acc[...]
        for c in range(n_chunks):
            lo = c * lacc
            xc = x_ref[:, :, lo:lo + lacc].astype(jnp.float32)
            if masked:
                pos = (k * hw_tile + lo
                       + jax.lax.broadcasted_iota(jnp.int32, xc.shape, 2))
                valid = pos < hw
                s = s + jnp.where(valid, xc, 0.0)
                m = jnp.maximum(m, jnp.where(valid, xc, -jnp.inf))
            else:
                s = s + xc
                m = jnp.maximum(m, xc)
        sum_acc[...] = s
        max_acc[...] = m

    if needs_mask:
        # Mask-free steady state; the (single) partial tail tile is handled
        # inside the finalize branch below.
        @pl.when(k != last)
        def _steady():
            _fold(False)
    else:
        _fold(False)

    @pl.when(k == last)
    def _finalize():
        if needs_mask:
            _fold(True)
        inv_hw = jnp.float32(1.0 / hw)
        avg = jnp.sum(sum_acc[...], axis=-1) * inv_hw        # (tb, C)
        mx = jnp.max(max_acc[...], axis=-1)                  # (tb, C)
        pooled = jnp.concatenate([avg, mx], axis=0)          # (2*tb, C)
        h = jnp.maximum(
            jnp.dot(pooled, w1t_ref[...],
                    preferred_element_type=jnp.float32), 0.0)  # (2*tb, Ch)
        y = jnp.dot(h, w2t_ref[...],
                    preferred_element_type=jnp.float32)        # (2*tb, C)
        o_ref[...] = jax.nn.sigmoid(y[:tb] + y[tb:]).astype(o_ref.dtype)


def _vmem_capacity_bytes():
    try:
        cap = int(getattr(pltpu.get_tpu_info(), "vmem_capacity_bytes", 0))
        if cap > 0:
            return cap
    except Exception:
        pass
    return 64 * 1024 * 1024   # conservative fallback (v7x physical)


def channel_attention(x, w1, w2, *, hw_tile=None):
    """x: (B, C, H, W) NCHW; w1: (C//r, C); w2: (C, C//r). Returns (B, C, 1, 1)."""
    B, C, H, W = x.shape
    HW = H * W
    in_dtype = x.dtype
    itemsize = jnp.dtype(in_dtype).itemsize
    x_flat = x.reshape(B, C, HW)                    # native dtype, no upcast

    # Pre-transpose the 1x1-conv weights once in the wrapper (tiny arrays) so
    # the kernel contracts directly with no in-kernel .T / relayout.
    w1t = jnp.asarray(w1, jnp.float32).T            # (C, Ch)
    w2t = jnp.asarray(w2, jnp.float32).T            # (Ch, C)

    # Per-generation VMEM budget; target ~2-8 MiB per x block.
    vmem_cap = _vmem_capacity_bytes()
    target_block_bytes = min(8 * 1024 * 1024, max(1 * 1024 * 1024, vmem_cap // 8))

    # ---- spatial tile (lanes) ----
    HW_pad = pl.cdiv(HW, 128) * 128
    if HW < 128:
        hw_tile = HW
    else:
        if hw_tile is None:
            lanes_budget = max(128, (target_block_bytes // (C * itemsize)) // 128 * 128)
            hw_tile = min(lanes_budget, 16 * 512, HW_pad)
        else:
            hw_tile = max(128, (int(hw_tile) // 128) * 128)
            hw_tile = min(hw_tile, HW_pad)
        if hw_tile >= 1024:
            hw_tile = (hw_tile // 512) * 512        # keep the fold unroll bounded

    # Accumulator lane width: largest of {512, 256, 128} dividing hw_tile.
    if hw_tile < 128:
        lacc = hw_tile
    else:
        lacc = 128
        for cand in (512, 256):
            if hw_tile % cand == 0:
                lacc = cand
                break

    # ---- adaptive row batching (tb must divide B) ----
    per_row_bytes = C * hw_tile * itemsize + 2 * C * lacc * 4
    tb = int(max(1, min(B, target_block_bytes // max(1, per_row_bytes))))
    while B % tb:
        tb -= 1

    n_hw = pl.cdiv(HW, hw_tile)
    grid = (B // tb, n_hw)
    needs_mask = (HW % hw_tile) != 0

    # VMEM limit from the actual footprint (double-buffered x + weights +
    # scratch + out) with 2x headroom, capped at the chip's capacity.
    x_blk_bytes = tb * C * hw_tile * itemsize
    w_bytes = (w1t.size + w2t.size) * 4
    scratch_bytes = 2 * tb * C * lacc * 4
    out_blk_bytes = tb * C * itemsize
    footprint = 2 * x_blk_bytes + 2 * w_bytes + scratch_bytes + 2 * out_blk_bytes
    vmem_limit = int(min(max(32 * 1024 * 1024, 2 * footprint), vmem_cap))

    kernel = functools.partial(_channel_attention_kernel,
                               hw=HW, hw_tile=hw_tile, lacc=lacc, tb=tb,
                               needs_mask=needs_mask)

    out = pl.pallas_call(
        kernel,
        out_shape=jax.ShapeDtypeStruct((B, C), in_dtype),
        grid_spec=pltpu.PrefetchScalarGridSpec(
            num_scalar_prefetch=0,
            grid=grid,
            in_specs=[
                pl.BlockSpec((tb, C, hw_tile), lambda b, k: (b, 0, k)),
                pl.BlockSpec(w1t.shape, lambda b, k: (0, 0)),
                pl.BlockSpec(w2t.shape, lambda b, k: (0, 0)),
            ],
            out_specs=pl.BlockSpec((tb, C), lambda b, k: (b, 0)),
            scratch_shapes=[
                pltpu.VMEM((tb, C, lacc), jnp.float32),   # running sum
                pltpu.VMEM((tb, C, lacc), jnp.float32),   # running max
            ],
        ),
        compiler_params=pltpu.CompilerParams(
            dimension_semantics=("parallel", "arbitrary"),
            vmem_limit_bytes=vmem_limit,
        ),
    )(x_flat, w1t, w2t)

    return out.reshape(B, C, 1, 1)


def _reference(x, w1, w2):
    xf = x.astype(jnp.float32)
    avg = jnp.mean(xf, axis=(2, 3))
    mx = jnp.max(xf, axis=(2, 3))
    w1f = jnp.asarray(w1, jnp.float32)
    w2f = jnp.asarray(w2, jnp.float32)

    def fc(v):
        return jnp.maximum(v @ w1f.T, 0.0) @ w2f.T

    out = jax.nn.sigmoid(fc(avg) + fc(mx))
    return out.astype(x.dtype)[:, :, None, None]


if __name__ == "__main__":
    key = jax.random.PRNGKey(0)
    B, C, ratio = 2, 64, 16
    Ch = C // ratio

    kx, k1, k2 = jax.random.split(key, 3)
    # Deterministic synthetic weights for the two bias-free 1x1 convs.
    w1 = jax.random.normal(k1, (Ch, C), dtype=jnp.float32) * 0.1
    w2 = jax.random.normal(k2, (C, Ch), dtype=jnp.float32) * 0.1

    def check(xin, **kw):
        out = channel_attention(xin, w1, w2, **kw)
        jax.block_until_ready(out)
        ref = _reference(xin, w1, w2)
        assert out.shape == (xin.shape[0], C, 1, 1)
        assert out.dtype == xin.dtype
        tol = 5e-5 if xin.dtype == jnp.float32 else 2e-2
        ok = jnp.allclose(out.astype(jnp.float32), ref.astype(jnp.float32),
                          atol=tol, rtol=tol)
        assert ok, f"mismatch for shape {xin.shape} dtype {xin.dtype}"

    # f32, 128-aligned spatial (16x16).
    x = jax.random.normal(kx, (B, C, 16, 16), dtype=jnp.float32)
    check(x)
    # Native bf16 streaming path (no wrapper-side upcast, bf16 output).
    check(x.astype(jnp.bfloat16))
    # Multi-step spatial reduction with multi-chunk fold and a masked tail tile.
    x3 = jax.random.normal(kx, (B, C, 48, 48), dtype=jnp.float32)
    check(x3, hw_tile=640)
    # Non-128-divisible spatial (padded block, masked).
    x4 = jax.random.normal(kx, (B, C, 10, 13), dtype=jnp.float32)
    check(x4)
    # Sub-128 spatial (hw_tile == HW < 128).
    x5 = jax.random.normal(kx, (B, C, 7, 7), dtype=jnp.float32)
    check(x5)

    print("KERNEL_OK")
</pallas_src>

<mosaic_0001>
module attributes {stable_mosaic.version = 11 : i64} {
  func.func @_channel_attention_kernel(%arg0: i32, %arg1: i32, %arg2: memref<2x64x256xf32, #tpu.memory_space<vmem>>, %arg3: memref<64x4xf32, #tpu.memory_space<vmem>>, %arg4: memref<4x64xf32, #tpu.memory_space<vmem>>, %arg5: memref<2x64xf32, #tpu.memory_space<vmem>>, %arg6: memref<2x64x256xf32, #tpu.memory_space<vmem>>, %arg7: memref<2x64x256xf32, #tpu.memory_space<vmem>>) attributes {dimension_semantics = [#tpu.dimension_semantics<parallel>, #tpu.dimension_semantics<arbitrary>], iteration_bounds = array<i64: 1, 1>, scalar_prefetch = 0 : i64, scratch_operands = 2 : i64, tpu.core_type = #tpu.core_type<tc>, window_params = [{transform_indices = @transform_0, window_bounds = array<i64: 2, 64, 256>}, {pipeline_mode = #tpu.pipeline_mode<synchronous>, transform_indices = @transform_1, window_bounds = array<i64: 64, 4>}, {pipeline_mode = #tpu.pipeline_mode<synchronous>, transform_indices = @transform_2, window_bounds = array<i64: 4, 64>}, {transform_indices = @transform_3, window_bounds = array<i64: 2, 64>}]} {
    %c0_i32 = arith.constant 0 : i32
    %0 = arith.cmpi eq, %arg1, %c0_i32 : i32
    %1 = arith.extui %0 : i1 to i32
    %c0_i32_0 = arith.constant 0 : i32
    %2 = arith.cmpi ne, %1, %c0_i32_0 : i32
    scf.if %2 {
      %cst = arith.constant 0.000000e+00 : f32
      %13 = vector.broadcast %cst : f32 to vector<2x64x256xf32>
      %c0_17 = arith.constant 0 : index
      %c0_18 = arith.constant 0 : index
      %c0_19 = arith.constant 0 : index
      %14 = vector.load %arg6[%c0_17, %c0_18, %c0_19] : memref<2x64x256xf32, #tpu.memory_space<vmem>>, vector<2x64x256xf32>
      tpu.vector_store %arg6[%c0_17, %c0_18, %c0_19], %13 {strides = array<i32>} : memref<2x64x256xf32, #tpu.memory_space<vmem>>, vector<2x64x256xf32>,
      %cst_20 = arith.constant 0xFF800000 : f32
      %15 = vector.broadcast %cst_20 : f32 to vector<2x64x256xf32>
      %c0_21 = arith.constant 0 : index
      %c0_22 = arith.constant 0 : index
      %c0_23 = arith.constant 0 : index
      %16 = vector.load %arg7[%c0_21, %c0_22, %c0_23] : memref<2x64x256xf32, #tpu.memory_space<vmem>>, vector<2x64x256xf32>
      tpu.vector_store %arg7[%c0_21, %c0_22, %c0_23], %15 {strides = array<i32>} : memref<2x64x256xf32, #tpu.memory_space<vmem>>, vector<2x64x256xf32>,
    } else {
    }
    %c0 = arith.constant 0 : index
    %c0_1 = arith.constant 0 : index
    %c0_2 = arith.constant 0 : index
    %3 = vector.load %arg6[%c0, %c0_1, %c0_2] : memref<2x64x256xf32, #tpu.memory_space<vmem>>, vector<2x64x256xf32>
    %c0_3 = arith.constant 0 : index
    %c0_4 = arith.constant 0 : index
    %c0_5 = arith.constant 0 : index
    %4 = vector.load %arg7[%c0_3, %c0_4, %c0_5] : memref<2x64x256xf32, #tpu.memory_space<vmem>>, vector<2x64x256xf32>
    %c0_6 = arith.constant 0 : index
    %c0_7 = arith.constant 0 : index
    %c0_8 = arith.constant 0 : index
    %5 = vector.load %arg2[%c0_6, %c0_7, %c0_8] : memref<2x64x256xf32, #tpu.memory_space<vmem>>, vector<2x64x256xf32>
    %6 = arith.addf %3, %5 : vector<2x64x256xf32>
    %7 = arith.maximumf %4, %5 : vector<2x64x256xf32>
    %c0_9 = arith.constant 0 : index
    %c0_10 = arith.constant 0 : index
    %c0_11 = arith.constant 0 : index
    %8 = vector.load %arg6[%c0_9, %c0_10, %c0_11] : memref<2x64x256xf32, #tpu.memory_space<vmem>>, vector<2x64x256xf32>
    tpu.vector_store %arg6[%c0_9, %c0_10, %c0_11], %6 {strides = array<i32>} : memref<2x64x256xf32, #tpu.memory_space<vmem>>, vector<2x64x256xf32>,
    %c0_12 = arith.constant 0 : index
    %c0_13 = arith.constant 0 : index
    %c0_14 = arith.constant 0 : index
    %9 = vector.load %arg7[%c0_12, %c0_13, %c0_14] : memref<2x64x256xf32, #tpu.memory_space<vmem>>, vector<2x64x256xf32>
    tpu.vector_store %arg7[%c0_12, %c0_13, %c0_14], %7 {strides = array<i32>} : memref<2x64x256xf32, #tpu.memory_space<vmem>>, vector<2x64x256xf32>,
    %c0_i32_15 = arith.constant 0 : i32
    %10 = arith.cmpi eq, %arg1, %c0_i32_15 : i32
    %11 = arith.extui %10 : i1 to i32
    %c0_i32_16 = arith.constant 0 : i32
    %12 = arith.cmpi ne, %11, %c0_i32_16 : i32
    scf.if %12 {
      %c0_17 = arith.constant 0 : index
      %c0_18 = arith.constant 0 : index
      %c0_19 = arith.constant 0 : index
      %13 = vector.load %arg6[%c0_17, %c0_18, %c0_19] : memref<2x64x256xf32, #tpu.memory_space<vmem>>, vector<2x64x256xf32>
      %cst = arith.constant dense<0.000000e+00> : vector<2x64xf32>
      %14 = vector.multi_reduction <add>, %13, %cst [2] : vector<2x64x256xf32> to vector<2x64xf32>
      %cst_20 = arith.constant 3.906250e-03 : f32
      %15 = vector.broadcast %cst_20 : f32 to vector<2x64xf32>
      %16 = arith.mulf %14, %15 : vector<2x64xf32>
      %c0_21 = arith.constant 0 : index
      %c0_22 = arith.constant 0 : index
      %c0_23 = arith.constant 0 : index
      %17 = vector.load %arg7[%c0_21, %c0_22, %c0_23] : memref<2x64x256xf32, #tpu.memory_space<vmem>>, vector<2x64x256xf32>
      %cst_24 = arith.constant dense<0xFF800000> : vector<2x64xf32>
      %18 = vector.multi_reduction <maximumf>, %17, %cst_24 [2] : vector<2x64x256xf32> to vector<2x64xf32>
      %19 = tpu.concatenate %16, %18 in 0 : vector<2x64xf32>, vector<2x64xf32> -> vector<4x64xf32>
      %c0_25 = arith.constant 0 : index
      %c0_26 = arith.constant 0 : index
      %20 = vector.load %arg3[%c0_25, %c0_26] : memref<64x4xf32, #tpu.memory_space<vmem>>, vector<64x4xf32>
      %cst_27 = arith.constant dense<0.000000e+00> : vector<4x4xf32>
      %21 = tpu.matmul %19, %20, %cst_27 {dimension_numbers = #tpu.dot_dimension_numbers<[1], [0], [0], [1], [0, 0, 1, 1], [], []>} : vector<4x64xf32>, vector<64x4xf32>, vector<4x4xf32> -> vector<4x4xf32>
      %cst_28 = arith.constant 0.000000e+00 : f32
      %22 = vector.broadcast %cst_28 : f32 to vector<4x4xf32>
      %23 = arith.maximumf %21, %22 : vector<4x4xf32>
      %c0_29 = arith.constant 0 : index
      %c0_30 = arith.constant 0 : index
      %24 = vector.load %arg4[%c0_29, %c0_30] : memref<4x64xf32, #tpu.memory_space<vmem>>, vector<4x64xf32>
      %cst_31 = arith.constant dense<0.000000e+00> : vector<4x64xf32>
      %25 = tpu.matmul %23, %24, %cst_31 {dimension_numbers = #tpu.dot_dimension_numbers<[1], [0], [0], [1], [0, 0, 1, 1], [], []>} : vector<4x4xf32>, vector<4x64xf32>, vector<4x64xf32> -> vector<4x64xf32>
      %26 = vector.extract_strided_slice %25 {offsets = [0, 0], sizes = [2, 64], strides = [1, 1]} : vector<4x64xf32> to vector<2x64xf32>
      %27 = vector.extract_strided_slice %25 {offsets = [2, 0], sizes = [2, 64], strides = [1, 1]} : vector<4x64xf32> to vector<2x64xf32>
      %28 = arith.addf %26, %27 : vector<2x64xf32>
      %29 = arith.negf %28 : vector<2x64xf32>
      %30 = math.exp %29 : vector<2x64xf32>
      %cst_32 = arith.constant 1.000000e+00 : f32
      %31 = vector.broadcast %cst_32 : f32 to vector<2x64xf32>
      %32 = arith.addf %31, %30 : vector<2x64xf32>
      %33 = arith.divf %31, %32 : vector<2x64xf32>
      %c0_33 = arith.constant 0 : index
      %c0_34 = arith.constant 0 : index
      %34 = vector.load %arg5[%c0_33, %c0_34] : memref<2x64xf32, #tpu.memory_space<vmem>>, vector<2x64xf32>
      tpu.vector_store %arg5[%c0_33, %c0_34], %33 {strides = array<i32>} : memref<2x64xf32, #tpu.memory_space<vmem>>, vector<2x64xf32>,
    } else {
    }
    return
  }
  func.func @transform_0(%arg0: i32, %arg1: i32) -> (i32, i32, i32) {
    %c0_i32 = arith.constant 0 : i32
    %c0_i32_0 = arith.constant 0 : i32
    return %arg0, %c0_i32, %arg1 : i32, i32, i32
  }
  func.func @transform_1(%arg0: i32, %arg1: i32) -> (i32, i32) {
    %c0_i32 = arith.constant 0 : i32
    %c0_i32_0 = arith.constant 0 : i32
    %c0_i32_1 = arith.constant 0 : i32
    return %c0_i32, %c0_i32_0 : i32, i32
  }
  func.func @transform_2(%arg0: i32, %arg1: i32) -> (i32, i32) {
    %c0_i32 = arith.constant 0 : i32
    %c0_i32_0 = arith.constant 0 : i32
    %c0_i32_1 = arith.constant 0 : i32
    return %c0_i32, %c0_i32_0 : i32, i32
  }
  func.func @transform_3(%arg0: i32, %arg1: i32) -> (i32, i32) {
    %c0_i32 = arith.constant 0 : i32
    %c0_i32_0 = arith.constant 0 : i32
    return %arg0, %c0_i32 : i32, i32
  }
}

</mosaic_0001>

<bundles_post_ra>
// kernel: tpu_custom_call.1
= control target key start
LH: loop header
LB: loop body
LE: loop exit
PB: predicated region body
PF: predicated region fallthrough
CT: control target
= control target key end

     0   :  { %8 = vsyncpa [#allocation5], 0  ;;  %s1197_s0 = inlined_call_operand.hbm [shape: f32[2,64,256], index: 0, kind: input, shape index: {}]   ;;  %s1198_s1 = inlined_call_operand.vmem [shape: f32[64,4], index: 1, kind: input, shape index: {}]   ;;  %s1199_s2 = inlined_call_operand.vmem [shape: f32[4,64], index: 2, kind: input, shape index: {}]   ;;  %s1200_s3 = inlined_call_operand.hbm [shape: f32[2,64], index: 3, kind: output, shape index: {}]  }
   0x1   :  { %9 = vsyncpa [#allocation6], 0  ;;  %s1011_s12 = smov [#allocation4]   ;;  %s963_s16 = scalar_lea.hbm %s1197_s0, 4096 }
   0x2   :  { %s15_s13 = sshll.u32 %s1011_s12, 4  ;;  %p964_p0 = scmp.ne.s32.totalorder %s1197_s0, %s963_s16  ;;  %s16_s13 = int_to_ptr.vmem [resolvable:$true] %s15_s13 }
   0x3   :  { %p967_p1 = scmp.lt.u32.totalorder %s963_s16, %s1197_s0 }
   0x5   :  { %p969_p2 = pnand %p967_p1, %p964_p0 }
   0x7   :  { %972 = shalt.err (!%p969_p2)
}
   0x8   :  { %s973_s21 = scalar_lea.vmem %s16_s13, 4096  ;;  %p978_p4 = scmp.lt.s32.totalorder %s16_s13, %s16_s13 }
   0x9   :  { %p974_p3 = scmp.ne.s32.totalorder %s16_s13, %s973_s21  ;;  %p979_p5 = scmp.lt.s32.totalorder %s973_s21, %s973_s21 }
   0xb   :  { %p980_p6 = por %p979_p5, %p978_p4 }
   0xd   :  { %p981_p7 = pnand %p980_p6, %p974_p3 }
   0xf   :  { %984 = shalt.err (!%p981_p7)
}
  0x10   :  { %s1012_s22 = smov 256   ;;  %s1013_s23 = smov 16  }
  0x11   :  { %21 = dma.hbm_to_vmem [thread:$0]  %s1197_s0, 4096, %s16_s13, [#allocation5], %s1012_s22, %s1012_s22, %s1013_s23  }
  0x12   :  { %1007 = dma.done.wait [#allocation5], 4096  }
  0x13   :  { %1008 = vsyncadd [#allocation5], 4294963200  ;;  %v177_v0 = vld [vmem:[#allocation4 + $0x80] sm:$0xff]  ;;  %v178_v1 = vld [vmem:[#allocation4 + $0x88] sm:$0xff]  ;;  %vm1015_vm0 = vmmov 0   ;;  %vm527_vm1 = vcmask 130112  }
  0x14   :  { %v161_v2 = vld [vmem:[#allocation4] sm:$0xff]  ;;  %v380_v3 = vadd.f32 %v178_v1, %v177_v0  ;;  %v162_v4 = vld [vmem:[#allocation4 + $0x8] sm:$0xff]  ;;  %v179_v5 = vld [vmem:[#allocation4 + $0x90] sm:$0xff]  ;;  %v476_v27 = vmax.f32 %v177_v0, %v178_v1  ;;  %vm534_vm2 = vcmask 195712   ;;  %vm541_vm3 = vcmask 261312   ;;  %s1017_s15 = smov [#allocation7]  }
  0x15   :  { %v180_v6 = vld [vmem:[#allocation4 + $0x98] sm:$0xff]  ;;  %v356_v7 = vadd.f32 %v162_v4, %v161_v2  ;;  %v163_v8 = vld [vmem:[#allocation4 + $0x10] sm:$0xff]  ;;  %v181_v12 = vld [vmem:[#allocation4 + $0xa0] sm:$0xff]  ;;  %v452_v25 = vmax.f32 %v161_v2, %v162_v4  ;;  %vm548_vm4 = vcmask 326912   ;;  %vm555_vm5 = vcmask 392512   ;;  %s892_s16 = sshll.u32 %s1017_s15, 4  ;;  %s893_s16 = int_to_ptr.vmem [resolvable:$true] %s892_s16 }
  0x16   :  { %v164_v9 = vld [vmem:[#allocation4 + $0x18] sm:$0xff]  ;;  %381 = vadd.xlane.f32.xlu1 %v380_v3  ;;  %v383_v10 = vadd.f32 %v180_v6, %v179_v5  ;;  %v182_v13 = vld [vmem:[#allocation4 + $0xa8] sm:$0xff]  ;;  %v165_v14 = vld [vmem:[#allocation4 + $0x20] sm:$0xff]  ;;  %v479_v26 = vmax.f32 %v179_v5, %v180_v6  ;;  %v1014_v3 = vmov 0.0|0.0   ;;  %vm562_vm6 = vcmask 458112   ;;  %p990_p9 = scmp.lt.s32.totalorder %s893_s16, %s893_s16 }
  0x17   :  { %357 = vadd.xlane.f32.xlu0 %v356_v7  ;;  %v359_v11 = vadd.f32 %v164_v9, %v163_v8  ;;  %v166_v15 = vld [vmem:[#allocation4 + $0x28] sm:$0xff]  ;;  %v386_v16 = vadd.f32 %v182_v13, %v181_v12  ;;  %v183_v18 = vld [vmem:[#allocation4 + $0xb0] sm:$0xff]  ;;  %v184_v19 = vld [vmem:[#allocation4 + $0xb8] sm:$0xff]  ;;  %v455_v24 = vmax.f32 %v163_v8, %v164_v9  ;;  %v482_v34 = vmax.f32 %v181_v12, %v182_v13 }
  0x18   :  { %v362_v17 = vadd.f32 %v166_v15, %v165_v14  ;;  %v167_v20 = vld [vmem:[#allocation4 + $0x30] sm:$0xff]  ;;  %v168_v21 = vld [vmem:[#allocation4 + $0x38] sm:$0xff]  ;;  %v389_v22 = vadd.f32 %v184_v19, %v183_v18  ;;  %v185_v28 = vld [vmem:[#allocation4 + $0xc0] sm:$0xff]  ;;  %v458_v35 = vmax.f32 %v165_v14, %v166_v15  ;;  %v485_v42 = vmax.f32 %v183_v18, %v184_v19  ;;  %940 = vmatprep.subr.bf16.mxu0 %v1014_v3 }
  0x19   :  { %v365_v23 = vadd.f32 %v168_v21, %v167_v20  ;;  %v186_v29 = vld [vmem:[#allocation4 + $0xc8] sm:$0xff]  ;;  %v169_v30 = vld [vmem:[#allocation4 + $0x40] sm:$0xff]  ;;  %v187_v36 = vld [vmem:[#allocation4 + $0xd0] sm:$0xff]  ;;  %v461_v43 = vmax.f32 %v167_v20, %v168_v21  ;;  %v1016_v13 = vmov 0.0   ;;  %vm569_vm7 = vcmask 523712  }
  0x1a   :  { %384 = vadd.xlane.f32.xlu1 %v383_v10  ;;  %v170_v31 = vld [vmem:[#allocation4 + $0x48] sm:$0xff]  ;;  %v392_v32 = vadd.f32 %v186_v29, %v185_v28  ;;  %v188_v37 = vld [vmem:[#allocation4 + $0xd8] sm:$0xff]  ;;  %v171_v38 = vld [vmem:[#allocation4 + $0x50] sm:$0xff]  ;;  %v488_v50 = vmax.f32 %v185_v28, %v186_v29  ;;  %932 = vmatprep.mubr.msk.f32.mxu0 %vm1015_vm0, %v1016_v13  ;;  %vm610_vm8 = vcmask 1041409   ;;  %vm707_vm9 = vcmask 1043459  }
  0x1b   :  { %360 = vadd.xlane.f32.xlu0 %v359_v11  ;;  %v368_v33 = vadd.f32 %v170_v31, %v169_v30  ;;  %v172_v39 = vld [vmem:[#allocation4 + $0x58] sm:$0xff]  ;;  %v395_v40 = vadd.f32 %v188_v37, %v187_v36  ;;  %v189_v44 = vld [vmem:[#allocation4 + $0xe0] sm:$0xff]  ;;  %v190_v45 = vld [vmem:[#allocation4 + $0xe8] sm:$0xff]  ;;  %v464_v51 = vmax.f32 %v169_v30, %v170_v31  ;;  %v491_v58 = vmax.f32 %v187_v36, %v188_v37 }
  0x1c   :  { %v371_v41 = vadd.f32 %v172_v39, %v171_v38  ;;  %v173_v46 = vld [vmem:[#allocation4 + $0x60] sm:$0xff]  ;;  %v174_v47 = vld [vmem:[#allocation4 + $0x68] sm:$0xff]  ;;  %v398_v48 = vadd.f32 %v190_v45, %v189_v44  ;;  %v191_v52 = vld [vmem:[#allocation4 + $0xf0] sm:$0xff]  ;;  %v467_v59 = vmax.f32 %v171_v38, %v172_v39  ;;  %v494_v60 = vmax.f32 %v189_v44, %v190_v45  ;;  %935 = vmatprep.subr.mxu1 %v1016_v13 }
  0x1d   :  { %v374_v49 = vadd.f32 %v174_v47, %v173_v46  ;;  %v192_v53 = vld [vmem:[#allocation4 + $0xf8] sm:$0xff]  ;;  %v175_v54 = vld [vmem:[#allocation4 + $0x70] sm:$0xff]  ;;  %v470_v61 = vmax.f32 %v173_v46, %v174_v47  ;;  %v712_v0 = vld [vmem:[%s1198_s1] sm:$0xff]  ;;  %937 = vmatprep.mubr.msk.f32.mxu1 %vm1015_vm0, %v1016_v13  ;;  %v516_v30 = vlaneseq  ;;  %vm710_vm10 = vcmask 1041408  }
  0x1e   :  { %387 = vadd.xlane.f32.xlu1 %v386_v16  ;;  %v176_v55 = vld [vmem:[#allocation4 + $0x78] sm:$0xff]  ;;  %v401_v56 = vadd.f32 %v192_v53, %v191_v52  ;;  %v497_v62 = vmax.f32 %v191_v52, %v192_v53  ;;  %v713_v1 = vld [vmem:[%s1198_s1 + $0x8] sm:$0xff]  ;;  %v714_v4 = vld [vmem:[%s1198_s1 + $0x10] sm:$0xff]  ;;  %vm720_vm11 = vcmask 523264   ;;  %vm800_vm12 = vcmask 1043456  }
  0x1f   :  { %363 = vadd.xlane.f32.xlu0 %v362_v17  ;;  %v377_v57 = vadd.f32 %v176_v55, %v175_v54  ;;  %v473_v63 = vmax.f32 %v175_v54, %v176_v55  ;;  %v941_v2 = vpack.c.bf16 %v713_v1, %v712_v0  ;;  %v715_v5 = vld [vmem:[%s1198_s1 + $0x18] sm:$0xff]  ;;  %v716_v7 = vld [vmem:[%s1198_s1 + $0x20] sm:$0xff]  ;;  %v717_v8 = vld [vmem:[%s1198_s1 + $0x28] sm:$0xff]  ;;  %vm796_vm13 = vcmask 31744  }
  0x20   :  { %v944_v6 = vpack.c.bf16 %v715_v5, %v714_v4  ;;  %v947_v9 = vpack.c.bf16 %v717_v8, %v716_v7  ;;  %v718_v10 = vld [vmem:[%s1198_s1 + $0x30] sm:$0xff]  ;;  %v719_v11 = vld [vmem:[%s1198_s1 + $0x38] sm:$0xff]  ;;  %vm884_vm14 = vcmask 517120  }
  0x21   :  { %942 = vmatpush3.bf16.msra.mxu0 %v941_v2  ;;  %v950_v12 = vpack.c.bf16 %v719_v11, %v718_v10 }
  0x22   :  { %390 = vadd.xlane.f32.xlu1 %v389_v22  ;;  %943 = vmatprep.subr.bf16.mxu0 %v1014_v3 }
  0x23   :  { %366 = vadd.xlane.f32.xlu0 %v365_v23 }
  0x25   :  { %945 = vmatpush3.bf16.msra.mxu0 %v944_v6 }
  0x26   :  { %456 = vmax.xlane.f32.xlu1 %v455_v24  ;;  %946 = vmatprep.subr.bf16.mxu0 %v1014_v3 }
  0x27   :  { %453 = vmax.xlane.f32.xlu0 %v452_v25 }
  0x29   :  { %948 = vmatpush3.bf16.msra.mxu0 %v947_v9 }
  0x2a   :  { %480 = vmax.xlane.f32.xlu1 %v479_v26  ;;  %949 = vmatprep.subr.bf16.mxu0 %v1014_v3 }
  0x2b   :  { %477 = vmax.xlane.f32.xlu0 %v476_v27 }
  0x2d   :  { %951 = vmatpush3.bf16.msra.mxu0 %v950_v12 }
  0x2e   :  { %393 = vadd.xlane.f32.xlu1 %v392_v32 }
  0x2f   :  { %369 = vadd.xlane.f32.xlu0 %v368_v33  ;;  %v517_v33 = vand.u32 127, %v516_v30 }
  0x31   :  { %v522_v36 = vadd.s32 4294967288, %v517_v33  ;;  %v529_v37 = vadd.s32 4294967280, %v517_v33  ;;  %v536_v39 = vadd.s32 4294967272, %v517_v33  ;;  %v543_v47 = vadd.s32 4294967264, %v517_v33 }
  0x32   :  { %483 = vmax.xlane.f32.xlu1 %v482_v34  ;;  %v519_v34 = vshrl.u32 %v516_v30, 7  ;;  %v557_v52 = vadd.s32 4294967248, %v517_v33 }
  0x33   :  { %459 = vmax.xlane.f32.xlu0 %v458_v35 }
  0x34   :  { %v1094_v44 = vsub.s32 %v529_v37, %v519_v34  ;;  %v1110_v4 = vsub.s32 %v557_v52, %v519_v34 }
  0x36   :  { %396 = vadd.xlane.f32.xlu1 %v395_v40  ;;  %v1090_v40 = vsub.s32 %v517_v33, %v519_v34 }
  0x37   :  { %372 = vadd.xlane.f32.xlu0 %v371_v41 }
  0x3a   :  { %486 = vmax.xlane.f32.xlu1 %v485_v42  ;;  %v1092_v42 = vsub.s32 %v522_v36, %v519_v34 }
  0x3b   :  { %462 = vmax.xlane.f32.xlu0 %v461_v43 }
  0x3e   :  { %399 = vadd.xlane.f32.xlu1 %v398_v48  ;;  %v550_v48 = vadd.s32 4294967256, %v517_v33 }
  0x3f   :  { %375 = vadd.xlane.f32.xlu0 %v374_v49 }
  0x40   :  { %v1106_v0 = vsub.s32 %v550_v48, %v519_v34 }
  0x42   :  { %489 = vmax.xlane.f32.xlu1 %v488_v50 }
  0x43   :  { %465 = vmax.xlane.f32.xlu0 %v464_v51  ;;  %v1096_v51 = vsub.s32 %v536_v39, %v519_v34 }
  0x46   :  { %402 = vadd.xlane.f32.xlu1 %v401_v56 }
  0x47   :  { %378 = vadd.xlane.f32.xlu0 %v377_v57  ;;  %v564_v57 = vadd.s32 4294967240, %v517_v33 }
  0x49   :  { %v1115_v8 = vsub.s32 %v564_v57, %v519_v34 }
  0x4a   :  { %492 = vmax.xlane.f32.xlu1 %v491_v58 }
  0x4b   :  { %468 = vmax.xlane.f32.xlu0 %v467_v59 }
  0x4e   :  { %495 = vmax.xlane.f32.xlu1 %v494_v60 }
  0x4f   :  { %471 = vmax.xlane.f32.xlu0 %v470_v61 }
  0x52   :  { %498 = vmax.xlane.f32.xlu1 %v497_v62  ;;  %v1104_v62 = vsub.s32 %v543_v47, %v519_v34 }
  0x53   :  { %474 = vmax.xlane.f32.xlu0 %v473_v63 }
  0xa3   :  { %v382_v14 = vpop.xlane.xlu1 %381 }
  0xa4   :  { %v358_v15 = vpop.xlane.xlu0 %357  ;;  %v412_v49 = vmul.f32 0.00390625, %v382_v14 }
  0xa5   :  { %v404_v53 = vmul.f32 0.00390625, %v358_v15 }
  0xa6   :  { %v574_v1 = vrot.slane %v412_v49, %v1090_v40 }
  0xa7   :  { %v385_v16 = vpop.xlane.xlu1 %384  ;;  %v521_v5 = vrot.slane %v404_v53, %v1090_v40 }
  0xa8   :  { %v361_v17 = vpop.xlane.xlu0 %360  ;;  %v413_v43 = vmul.f32 0.00390625, %v385_v16 }
  0xa9   :  { %v405_v46 = vmul.f32 0.00390625, %v361_v17 }
  0xaa   :  { %v578_v58 = vrot.slane %v413_v43, %v1092_v42 }
  0xab   :  { %v388_v18 = vpop.xlane.xlu1 %387  ;;  %v526_v61 = vrot.slane %v405_v46, %v1092_v42 }
  0xac   :  { %v364_v19 = vpop.xlane.xlu0 %363  ;;  %v414_v50 = vmul.f32 0.00390625, %v388_v18  ;;  %v579_v10 = vsel %vm527_vm1, %v578_v58, %v574_v1 }
  0xad   :  { %v406_v54 = vmul.f32 0.00390625, %v364_v19  ;;  %v528_v15 = vsel %vm527_vm1, %v526_v61, %v521_v5 }
  0xae   :  { %v583_v2 = vrot.slane %v414_v50, %v1094_v44 }
  0xaf   :  { %v391_v20 = vpop.xlane.xlu1 %390  ;;  %v533_v6 = vrot.slane %v406_v54, %v1094_v44 }
  0xb0   :  { %v367_v21 = vpop.xlane.xlu0 %366  ;;  %v415_v55 = vmul.f32 0.00390625, %v391_v20  ;;  %v584_v19 = vsel %vm534_vm2, %v583_v2, %v579_v10 }
  0xb1   :  { %v407_v59 = vmul.f32 0.00390625, %v367_v21 }
  0xb2   :  { %v588_v7 = vrot.slane %v415_v55, %v1096_v51 }
  0xb3   :  { %v1074_v22 = vpop.xlane.xlu1 %456  ;;  %v540_v11 = vrot.slane %v407_v59, %v1096_v51 }
  0xb4   :  { %v1076_v23 = vpop.xlane.xlu0 %453  ;;  %v636_v12 = vrot.slane %v1074_v22, %v1092_v42 }
  0xb5   :  { %v632_v13 = vrot.slane %v1076_v23, %v1090_v40  ;;  %v535_v23 = vsel %vm534_vm2, %v533_v6, %v528_v15 }
  0xb7   :  { %v1078_v24 = vpop.xlane.xlu1 %480 }
  0xb8   :  { %v1080_v25 = vpop.xlane.xlu0 %477  ;;  %v675_v16 = vrot.slane %v1078_v24, %v1092_v42  ;;  %v542_v24 = vsel %vm541_vm3, %v540_v11, %v535_v23 }
  0xb9   :  { %v671_v17 = vrot.slane %v1080_v25, %v1090_v40  ;;  %v637_v25 = vsel %vm527_vm1, %v636_v12, %v632_v13 }
  0xbb   :  { %v394_v26 = vpop.xlane.xlu1 %393  ;;  %v676_v39 = vsel %vm527_vm1, %v675_v16, %v671_v17  ;;  %v795_v16 = vld [vmem:[%s1199_s2] sm:$0xf]  ;;  %s985_s2 = scalar_lea.vmem %s893_s16, 32 }
  0xbc   :  { %v370_v27 = vpop.xlane.xlu0 %369  ;;  %v416_v63 = vmul.f32 0.00390625, %v394_v26  ;;  %v589_v26 = vsel %vm541_vm3, %v588_v7, %v584_v19  ;;  %936 = vmatpush3.msk.msra.mxu1 %vm800_vm12, %v795_v16  ;;  %p986_p8 = scmp.ne.s32.totalorder %s893_s16, %s985_s2  ;;  %p991_p10 = scmp.lt.s32.totalorder %s985_s2, %s985_s2 }
  0xbd   :  { %v408_v3 = vmul.f32 0.00390625, %v370_v27 }
  0xbe   :  { %v593_v18 = vrot.slane %v416_v63, %v1104_v62  ;;  %p992_p11 = por %p991_p10, %p990_p9 }
  0xbf   :  { %v1082_v28 = vpop.xlane.xlu1 %483  ;;  %v547_v20 = vrot.slane %v408_v3, %v1104_v62 }
  0xc0   :  { %v1084_v29 = vpop.xlane.xlu0 %459  ;;  %v680_v34 = vrot.slane %v1082_v28, %v1094_v44  ;;  %p993_p12 = pnand %p992_p11, %p986_p8 }
  0xc2   :  { %v681_v48 = vsel %vm534_vm2, %v680_v34, %v676_v39 }
  0xc3   :  { %v397_v31 = vpop.xlane.xlu1 %396 }
  0xc4   :  { %v373_v32 = vpop.xlane.xlu0 %372  ;;  %v417_v21 = vmul.f32 0.00390625, %v397_v31  ;;  %v594_v31 = vsel %vm548_vm4, %v593_v18, %v589_v26 }
  0xc5   :  { %v409_v22 = vmul.f32 0.00390625, %v373_v32  ;;  %v641_v32 = vrot.slane %v1084_v29, %v1094_v44 }
  0xc6   :  { %v598_v42 = vrot.slane %v417_v21, %v1106_v0 }
  0xc7   :  { %v1086_v35 = vpop.xlane.xlu1 %486  ;;  %v554_v43 = vrot.slane %v409_v22, %v1106_v0 }
  0xc8   :  { %v1088_v38 = vpop.xlane.xlu0 %462  ;;  %v685_v28 = vrot.slane %v1086_v35, %v1096_v51  ;;  %v599_v55 = vsel %vm555_vm5, %v598_v42, %v594_v31 }
  0xca   :  { %v686_v57 = vsel %vm541_vm3, %v685_v28, %v681_v48 }
  0xcb   :  { %v400_v41 = vpop.xlane.xlu1 %399 }
  0xcc   :  { %v376_v45 = vpop.xlane.xlu0 %375  ;;  %v418_v27 = vmul.f32 0.00390625, %v400_v41  ;;  %v549_v41 = vsel %vm548_vm4, %v547_v20, %v542_v24 }
  0xcd   :  { %v410_v30 = vmul.f32 0.00390625, %v376_v45  ;;  %v646_v45 = vrot.slane %v1088_v38, %v1096_v51  ;;  %v642_v38 = vsel %vm534_vm2, %v641_v32, %v637_v25 }
  0xce   :  { %v603_v46 = vrot.slane %v418_v27, %v1110_v4 }
  0xcf   :  { %v1098_v56 = vpop.xlane.xlu1 %489  ;;  %v561_v47 = vrot.slane %v410_v30, %v1110_v4  ;;  %v647_v59 = vsel %vm541_vm3, %v646_v45, %v642_v38 }
  0xd0   :  { %v1101_v60 = vpop.xlane.xlu0 %465  ;;  %v690_v29 = vrot.slane %v1098_v56, %v1104_v62  ;;  %v556_v56 = vsel %vm555_vm5, %v554_v43, %v549_v41 }
  0xd1   :  { %v651_v49 = vrot.slane %v1101_v60, %v1104_v62  ;;  %v604_v60 = vsel %vm562_vm6, %v603_v46, %v599_v55  ;;  %v563_v61 = vsel %vm562_vm6, %v561_v47, %v556_v56 }
  0xd2   :  { %v691_v62 = vsel %vm548_vm4, %v690_v29, %v686_v57 }
  0xd3   :  { %v403_v9 = vpop.xlane.xlu1 %402 }
  0xd4   :  { %v379_v14 = vpop.xlane.xlu0 %378  ;;  %v419_v36 = vmul.f32 0.00390625, %v403_v9 }
  0xd5   :  { %v411_v40 = vmul.f32 0.00390625, %v379_v14 }
  0xd6   :  { %v608_v50 = vrot.slane %v419_v36, %v1115_v8 }
  0xd7   :  { %v493_v33 = vpop.xlane.xlu1 %492  ;;  %v568_v51 = vrot.slane %v411_v40, %v1115_v8 }
  0xd8   :  { %v469_v37 = vpop.xlane.xlu0 %468  ;;  %v695_v35 = vrot.slane %v493_v33, %v1106_v0  ;;  %v609_v1 = vsel %vm569_vm7, %v608_v50, %v604_v60 }
  0xd9   :  { %v656_v53 = vrot.slane %v469_v37, %v1106_v0  ;;  %v652_v0 = vsel %vm548_vm4, %v651_v49, %v647_v59 }
  0xda   :  { %v696_v2 = vsel %vm555_vm5, %v695_v35, %v691_v62 }
  0xdb   :  { %v496_v44 = vpop.xlane.xlu1 %495  ;;  %v657_v6 = vsel %vm555_vm5, %v656_v53, %v652_v0 }
  0xdc   :  { %v472_v52 = vpop.xlane.xlu0 %471  ;;  %v700_v54 = vrot.slane %v496_v44, %v1110_v4 }
  0xdd   :  { %v661_v58 = vrot.slane %v472_v52, %v1110_v4  ;;  %v570_v4 = vsel %vm569_vm7, %v568_v51, %v563_v61 }
  0xde   :  { %v701_v7 = vsel %vm562_vm6, %v700_v54, %v696_v2  ;;  %v611_v13 = vsel %vm610_vm8, %v609_v1, %v570_v4 }
  0xdf   :  { %v499_v63 = vpop.xlane.xlu1 %498  ;;  %v662_v10 = vsel %vm562_vm6, %v661_v58, %v657_v6 }
  0xe0   :  { %v705_v3 = vrot.slane %v499_v63, %v1115_v8  ;;  %v475_v5 = vpop.xlane.xlu0 %474 }
  0xe1   :  { %v666_v9 = vrot.slane %v475_v5, %v1115_v8 }
  0xe2   :  { %v706_v11 = vsel %vm569_vm7, %v705_v3, %v701_v7 }
  0xe3   :  { %v667_v12 = vsel %vm569_vm7, %v666_v9, %v662_v10 }
  0xe4   :  { %v708_v14 = vsel %vm707_vm9, %v706_v11, %v667_v12 }
  0xe5   :  { %v711_v15 = vsel %vm710_vm10, %v611_v13, %v708_v14 }
  0xe6   :  { %933 = vmatmul.mubr.msk.f32.vlgmr.msra.gmra.mrb[0].mxu0 %vm720_vm11, %v711_v15 }
 0x1b9   :  { %v790_v8 = vpop.f32.mrb[0].mxu0 }
 0x1ba   :  { %v794_v17 = vmax.f32 %v790_v8, 0.0  ;;  %v934_v18 = vpop.f32.mrb[1].mxu0 }
 0x1bc   :  { %938 = vmatmul.mubr.msk.f32.vlgmr.msra.gmra.mrb[0].mxu1 %vm796_vm13, %v794_v17 }
 0x28f   :  { %v870_v19 = vpop.f32.mrb[0].mxu1 }
 0x290   :  { %v875_v20 = vrot.slane %v870_v19, 2  ;;  %v939_v21 = vpop.f32.mrb[1].mxu1 }
 0x292   :  { %v877_v22 = vadd.f32 %v875_v20, %v870_v19 }
 0x294   :  { %v904_v23 = vmul.f32 -1.442695, %v877_v22 }
 0x296   :  { %959 = vpow2.f32 %v904_v23 }
 0x2a0   :  { %v960_v26 = vpop.eup %959 }
 0x2a1   :  { %v881_v27 = vadd.f32 1.0, %v960_v26 }
 0x2a3   :  { %961 = vrcp.f32 %v881_v27 }
 0x2ad   :  { %v962_v30 = vpop.eup %961 }
 0x2ae   :  { %885 = vst.msk [vmem:[#allocation7] sm:$0x3] %vm884_vm14, %v962_v30 }
 0x2af   :  { %996 = shalt.err (!%p993_p12)
}
 0x2b0   :  { %s997_s19 = scalar_lea.hbm %s1200_s3, 32 }
 0x2b1   :  { %p998_p13 = scmp.ne.s32.totalorder %s1200_s3, %s997_s19  ;;  %p1001_p0 = scmp.lt.u32.totalorder %s997_s19, %s1200_s3 }
 0x2b3   :  { %p1003_p1 = pnand %p1001_p0, %p998_p13 }
 0x2b5   :  { %1006 = shalt.err (!%p1003_p1)
}
 0x2b6   :  { %895 = dma.vmem_to_hbm [thread:$0]  %s893_s16, 32, %s1200_s3, [#allocation6]  }
 0x2b7   :  { %1009 = dma.done.wait [#allocation6], 32  }
 0x2b8   :  { %1010 = vsyncadd [#allocation6], 4294967264 }
 0x2b9   :  { %899 = vsyncpa [#allocation5], 1 }
 0x2ba   :  { %900 = vsyncpa [#allocation6], 1 }

</bundles_post_ra>
